<compile_context>
chip_gen: v7x
topology: tpu7x:2x2x1
jax: 0.10.0
libtpu: 0.0.40
codegen_flags: <defaults>
</compile_context>

<pallas_src>
import functools

import jax
import jax.numpy as jnp
from jax import lax
from jax.experimental import pallas as pl
from jax.experimental.pallas import tpu as pltpu


def knn_conv_kernel(f_ref, knn_ref, wac_ref, wbc_ref, b1_ref,
                    w2_ref, b2_ref, w3_ref, b3_ref, out_ref):
    """One tile of TN points.

    f_ref   : (TN, C)       center point features            (compute dtype)
    knn_ref : (TN*K, C)     neighbor features, grouped per point (compute dtype)
    wac_ref : (C, H)        (Wa - Wc)^T of linear1           (compute dtype)
    wbc_ref : (C, H)        (Wb + Wc)^T of linear1           (compute dtype)
    b1_ref  : (1, H)  f32
    w2_ref  : (H, H)        linear2 weight, transposed       (compute dtype)
    b2_ref  : (1, H)  f32
    w3_ref  : (O, H)  f32   linear3 weight (original orientation)
    b3_ref  : (O, 1)  f32
    out_ref : (O, TN) f32   lane-dense output tile
    """
    tn = f_ref.shape[0]
    k = knn_ref.shape[0] // tn
    h = w2_ref.shape[0]

    # center-point contribution to linear1 (shared across all K neighbors)
    a = jnp.dot(f_ref[...], wac_ref[...],
                preferred_element_type=jnp.float32) + b1_ref[...]        # (TN, H)

    # linear1 neighbor contribution: one big-M matmul over all TN*K rows
    gw = jnp.dot(knn_ref[...], wbc_ref[...],
                 preferred_element_type=jnp.float32)                     # (TN*K, H)
    h1 = jnp.maximum(gw.reshape(tn, k, h) + a[:, None, :], 0.0)          # (TN, K, H)

    # linear2: one big-M matmul with compute-dtype inputs, f32 accumulation
    h2 = jnp.maximum(
        jnp.dot(h1.reshape(tn * k, h).astype(w2_ref.dtype), w2_ref[...],
                preferred_element_type=jnp.float32) + b2_ref[...], 0.0)  # (TN*K, H)

    # max over neighbors (sublane reduce)
    m = jnp.max(h2.reshape(tn, k, h), axis=1)                            # (TN, H)

    # linear3 computed lane-dense as (O, TN): w3 (O,H) contracted with m (TN,H)
    out = lax.dot_general(w3_ref[...], m, (((1,), (1,)), ((), ())),
                          preferred_element_type=jnp.float32) + b3_ref[...]
    out_ref[...] = out.astype(out_ref.dtype)


def _vmem_estimate(tile, c, h, o, k, act_bytes):
    """Rough per-grid-step VMEM footprint (bytes)."""
    inputs = 2 * (tile * c + tile * k * c) * act_bytes           # double-buffered acts
    outputs = 2 * o * max(tile, 128) * 4                         # double-buffered out
    weights = 2 * ((2 * c * h + h * h) * act_bytes
                   + (o * h + 2 * h + o) * 4)
    interm = (3 * 4 + act_bytes) * tile * k * h + 3 * tile * h * 4
    return inputs + outputs + weights + interm


def _choose_tile(bn, requested, c, h, o, k, act_bytes, budget=40 * 1024 * 1024):
    """Return (tile, padded_bn).  Single full tile when it fits; otherwise a
    128-aligned tile balanced to minimize padding waste and shrunk until the
    VMEM estimate fits the budget."""
    if bn <= requested and _vmem_estimate(bn, c, h, o, k, act_bytes) <= budget:
        return bn, bn                                   # block == full array dims
    req = max(128, (min(requested, bn) // 128) * 128)
    nt = max(1, -(-bn // req))                          # number of tiles
    tile = ((-(-bn // nt) + 127) // 128) * 128          # balanced, lane-aligned
    while tile > 128 and _vmem_estimate(tile, c, h, o, k, act_bytes) > budget:
        tile -= 128
    bn_pad = -(-bn // tile) * tile
    return tile, bn_pad


def init_params(key, in_channel, hidden_channel, out_channel):
    """Deterministic parameter init matching the PyTorch module's shapes."""
    k1, k2, k3, k4, k5 = jax.random.split(key, 5)
    fan1 = in_channel * 3
    w1 = jax.random.uniform(k1, (hidden_channel, fan1), jnp.float32,
                            -1.0 / jnp.sqrt(fan1), 1.0 / jnp.sqrt(fan1))
    b1 = jax.random.uniform(k2, (hidden_channel,), jnp.float32,
                            -1.0 / jnp.sqrt(fan1), 1.0 / jnp.sqrt(fan1))
    w2 = jax.random.uniform(k3, (hidden_channel, hidden_channel), jnp.float32,
                            -1.0 / jnp.sqrt(hidden_channel),
                            1.0 / jnp.sqrt(hidden_channel))
    b2 = jax.random.uniform(k4, (hidden_channel,), jnp.float32,
                            -1.0 / jnp.sqrt(hidden_channel),
                            1.0 / jnp.sqrt(hidden_channel))
    # nn.init.normal_(linear3.weight, std=0.05); zeros_(linear3.bias)
    w3 = 0.05 * jax.random.normal(k5, (out_channel, hidden_channel), jnp.float32)
    b3 = jnp.zeros((out_channel,), jnp.float32)
    return dict(w1=w1, b1=b1, w2=w2, b2=b2, w3=w3, b3=b3)


@functools.partial(jax.jit, static_argnames=("tile_n", "compute_dtype"))
def knn_conv_unit(f, knn_idx, params, tile_n=512, compute_dtype=jnp.bfloat16):
    """f: [B, N, C], knn_idx: [B, N, K] int32 -> [B, N, out_channel].

    tile_n is the main tuning knob (points per grid step); it is auto-shrunk
    to fit the VMEM budget, so the same setting works on v5e/v6e/v7x.
    """
    B, N, C = f.shape
    K = knn_idx.shape[-1]
    H = params["w1"].shape[0]
    O = params["w3"].shape[0]
    BN = B * N
    act_bytes = jnp.dtype(compute_dtype).itemsize

    tile, BN_pad = _choose_tile(BN, tile_n, C, H, O, K, act_bytes)
    grid = (BN_pad // tile,)

    # ---- glue: knn gather in natural (B, N, K, C) layout (no K-first
    #      transpose); activations cast to compute_dtype for the HBM path ----
    # TODO(synk): an in-kernel gather via PrefetchScalarGridSpec-driven DMA
    # would avoid materializing the K-expanded tensor in HBM entirely.
    fc = f.astype(compute_dtype)
    knn_feat = jax.vmap(lambda fb, ib: fb[ib])(fc, knn_idx)       # (B, N, K, C)
    g2 = knn_feat.reshape(BN * K, C)                              # rows grouped per point
    f2 = fc.reshape(BN, C)
    pad = BN_pad - BN
    if pad:
        f2 = jnp.pad(f2, ((0, pad), (0, 0)))
        g2 = jnp.pad(g2, ((0, pad * K), (0, 0)))

    # ---- glue: fold the concat into linear1's weight blocks ----
    w1, b1 = params["w1"], params["b1"]                           # (H, 3C), (H,)
    wa, wb, wc = w1[:, :C], w1[:, C:2 * C], w1[:, 2 * C:]
    wac_t = (wa - wc).T.astype(compute_dtype)                     # (C, H)
    wbc_t = (wb + wc).T.astype(compute_dtype)                     # (C, H)
    w2_t = params["w2"].T.astype(compute_dtype)                   # (H, H)
    w3 = params["w3"]                                             # (O, H) f32
    b1r = b1.reshape(1, H)
    b2r = params["b2"].reshape(1, H)
    b3r = params["b3"].reshape(O, 1)

    # explicit scoped-VMEM limit (defaults are only 16/32 MiB; cap at 64 MiB
    # so the same setting is legal on v7x's 64 MiB physical VMEM)
    est = _vmem_estimate(tile, C, H, O, K, act_bytes)
    vmem_limit = int(min(max(2 * est, 32 * 1024 * 1024), 64 * 1024 * 1024))

    out2 = pl.pallas_call(
        knn_conv_kernel,
        out_shape=jax.ShapeDtypeStruct((O, BN_pad), jnp.float32),
        grid_spec=pltpu.PrefetchScalarGridSpec(
            num_scalar_prefetch=0,
            grid=grid,
            in_specs=[
                pl.BlockSpec((tile, C), lambda i: (i, 0)),        # f
                pl.BlockSpec((tile * K, C), lambda i: (i, 0)),    # knn feats (flat)
                pl.BlockSpec((C, H), lambda i: (0, 0)),           # (Wa-Wc)^T
                pl.BlockSpec((C, H), lambda i: (0, 0)),           # (Wb+Wc)^T
                pl.BlockSpec((1, H), lambda i: (0, 0)),           # b1
                pl.BlockSpec((H, H), lambda i: (0, 0)),           # W2^T
                pl.BlockSpec((1, H), lambda i: (0, 0)),           # b2
                pl.BlockSpec((O, H), lambda i: (0, 0)),           # W3
                pl.BlockSpec((O, 1), lambda i: (0, 0)),           # b3
            ],
            out_specs=pl.BlockSpec((O, tile), lambda i: (0, i)),  # lane-dense
        ),
        compiler_params=pltpu.CompilerParams(
            dimension_semantics=("parallel",),
            vmem_limit_bytes=vmem_limit),
    )(f2, g2, wac_t, wbc_t, b1r, w2_t, b2r, w3, b3r)

    out2 = out2[:, :BN] if pad else out2
    return out2.T.reshape(B, N, O)


def reference_forward(f, knn_idx, params):
    """Pure-JAX transcription of the PyTorch forward (for verification)."""
    knn_feat = jax.vmap(lambda fb, ib: fb[ib])(f, knn_idx)        # (B, N, K, C)
    f_tiled = jnp.broadcast_to(f[:, :, None, :], knn_feat.shape)
    x = jnp.concatenate([f_tiled, knn_feat, knn_feat - f_tiled], axis=-1)
    x = jax.nn.relu(x @ params["w1"].T + params["b1"])
    x = jax.nn.relu(x @ params["w2"].T + params["b2"])
    x = jnp.max(x, axis=2)
    return x @ params["w3"].T + params["b3"]


if __name__ == "__main__":
    B, N, K = 2, 16, 8
    in_channel, hidden_channel, out_channel = 4, 32, 4

    key = jax.random.PRNGKey(0)
    k_f, k_idx, k_p, k_f2, k_idx2 = jax.random.split(key, 5)

    f = jax.random.normal(k_f, (B, N, in_channel), jnp.float32)
    knn_idx = jax.random.randint(k_idx, (B, N, K), 0, N, jnp.int32)
    params = init_params(k_p, in_channel, hidden_channel, out_channel)

    ref = reference_forward(f, knn_idx, params)

    # exact-precision path (f32 everywhere): tight numerical check
    out_f32 = jax.block_until_ready(
        knn_conv_unit(f, knn_idx, params, compute_dtype=jnp.float32))
    assert out_f32.shape == (B, N, out_channel)
    assert jnp.allclose(out_f32, ref, atol=1e-4, rtol=1e-4), (
        float(jnp.max(jnp.abs(out_f32 - ref))))

    # bandwidth/MXU-optimized default path (bf16 inputs, f32 accumulation)
    out_bf16 = jax.block_until_ready(knn_conv_unit(f, knn_idx, params))
    assert out_bf16.shape == (B, N, out_channel)
    assert jnp.allclose(out_bf16, ref, atol=5e-2, rtol=5e-2), (
        float(jnp.max(jnp.abs(out_bf16 - ref))))

    # multi-tile + padding path (B*N not a multiple of the 128-aligned tile)
    N2 = 300
    f_big = jax.random.normal(k_f2, (B, N2, in_channel), jnp.float32)
    knn_idx_big = jax.random.randint(k_idx2, (B, N2, K), 0, N2, jnp.int32)
    ref_big = reference_forward(f_big, knn_idx_big, params)
    out_big = jax.block_until_ready(
        knn_conv_unit(f_big, knn_idx_big, params, tile_n=256,
                      compute_dtype=jnp.float32))
    assert out_big.shape == (B, N2, out_channel)
    assert jnp.allclose(out_big, ref_big, atol=1e-4, rtol=1e-4), (
        float(jnp.max(jnp.abs(out_big - ref_big))))

    print("KERNEL_OK")
</pallas_src>

<mosaic_0001>
module attributes {stable_mosaic.version = 11 : i64} {
  func.func @knn_conv_kernel(%arg0: i32, %arg1: memref<32x4xf32, #tpu.memory_space<vmem>>, %arg2: memref<256x4xf32, #tpu.memory_space<vmem>>, %arg3: memref<4x32xf32, #tpu.memory_space<vmem>>, %arg4: memref<4x32xf32, #tpu.memory_space<vmem>>, %arg5: memref<1x32xf32, #tpu.memory_space<vmem>>, %arg6: memref<32x32xf32, #tpu.memory_space<vmem>>, %arg7: memref<1x32xf32, #tpu.memory_space<vmem>>, %arg8: memref<4x32xf32, #tpu.memory_space<vmem>>, %arg9: memref<4x1xf32, #tpu.memory_space<vmem>>, %arg10: memref<4x32xf32, #tpu.memory_space<vmem>>) attributes {dimension_semantics = [#tpu.dimension_semantics<parallel>], iteration_bounds = array<i64: 1>, scalar_prefetch = 0 : i64, scratch_operands = 0 : i64, tpu.core_type = #tpu.core_type<tc>, window_params = [{transform_indices = @transform_0, window_bounds = array<i64: 32, 4>}, {transform_indices = @transform_1, window_bounds = array<i64: 256, 4>}, {pipeline_mode = #tpu.pipeline_mode<synchronous>, transform_indices = @transform_2, window_bounds = array<i64: 4, 32>}, {pipeline_mode = #tpu.pipeline_mode<synchronous>, transform_indices = @transform_3, window_bounds = array<i64: 4, 32>}, {pipeline_mode = #tpu.pipeline_mode<synchronous>, transform_indices = @transform_4, window_bounds = array<i64: 1, 32>}, {pipeline_mode = #tpu.pipeline_mode<synchronous>, transform_indices = @transform_5, window_bounds = array<i64: 32, 32>}, {pipeline_mode = #tpu.pipeline_mode<synchronous>, transform_indices = @transform_6, window_bounds = array<i64: 1, 32>}, {pipeline_mode = #tpu.pipeline_mode<synchronous>, transform_indices = @transform_7, window_bounds = array<i64: 4, 32>}, {pipeline_mode = #tpu.pipeline_mode<synchronous>, transform_indices = @transform_8, window_bounds = array<i64: 4, 1>}, {transform_indices = @transform_9, window_bounds = array<i64: 4, 32>}]} {
    %c0 = arith.constant 0 : index
    %c0_0 = arith.constant 0 : index
    %0 = vector.load %arg1[%c0, %c0_0] : memref<32x4xf32, #tpu.memory_space<vmem>>, vector<32x4xf32>
    %c0_1 = arith.constant 0 : index
    %c0_2 = arith.constant 0 : index
    %1 = vector.load %arg3[%c0_1, %c0_2] : memref<4x32xf32, #tpu.memory_space<vmem>>, vector<4x32xf32>
    %cst = arith.constant dense<0.000000e+00> : vector<32x32xf32>
    %2 = tpu.matmul %0, %1, %cst {dimension_numbers = #tpu.dot_dimension_numbers<[1], [0], [0], [1], [0, 0, 1, 1], [], []>} : vector<32x4xf32>, vector<4x32xf32>, vector<32x32xf32> -> vector<32x32xf32>
    %c0_3 = arith.constant 0 : index
    %c0_4 = arith.constant 0 : index
    %3 = vector.load %arg5[%c0_3, %c0_4] : memref<1x32xf32, #tpu.memory_space<vmem>>, vector<1x32xf32>
    %4 = vector.broadcast %3 : vector<1x32xf32> to vector<32x32xf32>
    %5 = arith.addf %2, %4 : vector<32x32xf32>
    %c0_5 = arith.constant 0 : index
    %c0_6 = arith.constant 0 : index
    %6 = vector.load %arg2[%c0_5, %c0_6] : memref<256x4xf32, #tpu.memory_space<vmem>>, vector<256x4xf32>
    %c0_7 = arith.constant 0 : index
    %c0_8 = arith.constant 0 : index
    %7 = vector.load %arg4[%c0_7, %c0_8] : memref<4x32xf32, #tpu.memory_space<vmem>>, vector<4x32xf32>
    %cst_9 = arith.constant dense<0.000000e+00> : vector<256x32xf32>
    %8 = tpu.matmul %6, %7, %cst_9 {dimension_numbers = #tpu.dot_dimension_numbers<[1], [0], [0], [1], [0, 0, 1, 1], [], []>} : vector<256x4xf32>, vector<4x32xf32>, vector<256x32xf32> -> vector<256x32xf32>
    %9 = vector.shape_cast %8 : vector<256x32xf32> to vector<32x8x32xf32>
    %10 = vector.shape_cast %5 : vector<32x32xf32> to vector<32x1x32xf32>
    %11 = vector.broadcast %10 : vector<32x1x32xf32> to vector<32x8x32xf32>
    %12 = arith.addf %9, %11 : vector<32x8x32xf32>
    %cst_10 = arith.constant 0.000000e+00 : f32
    %13 = vector.broadcast %cst_10 : f32 to vector<32x8x32xf32>
    %14 = arith.maximumf %12, %13 : vector<32x8x32xf32>
    %15 = vector.shape_cast %14 : vector<32x8x32xf32> to vector<256x32xf32>
    %c0_11 = arith.constant 0 : index
    %c0_12 = arith.constant 0 : index
    %16 = vector.load %arg6[%c0_11, %c0_12] : memref<32x32xf32, #tpu.memory_space<vmem>>, vector<32x32xf32>
    %cst_13 = arith.constant dense<0.000000e+00> : vector<256x32xf32>
    %17 = tpu.matmul %15, %16, %cst_13 {dimension_numbers = #tpu.dot_dimension_numbers<[1], [0], [0], [1], [0, 0, 1, 1], [], []>} : vector<256x32xf32>, vector<32x32xf32>, vector<256x32xf32> -> vector<256x32xf32>
    %c0_14 = arith.constant 0 : index
    %c0_15 = arith.constant 0 : index
    %18 = vector.load %arg7[%c0_14, %c0_15] : memref<1x32xf32, #tpu.memory_space<vmem>>, vector<1x32xf32>
    %19 = vector.broadcast %18 : vector<1x32xf32> to vector<256x32xf32>
    %20 = arith.addf %17, %19 : vector<256x32xf32>
    %cst_16 = arith.constant 0.000000e+00 : f32
    %21 = vector.broadcast %cst_16 : f32 to vector<256x32xf32>
    %22 = arith.maximumf %20, %21 : vector<256x32xf32>
    %23 = vector.shape_cast %22 : vector<256x32xf32> to vector<32x8x32xf32>
    %cst_17 = arith.constant dense<0xFF800000> : vector<32x32xf32>
    %24 = vector.multi_reduction <maximumf>, %23, %cst_17 [1] : vector<32x8x32xf32> to vector<32x32xf32>
    %c0_18 = arith.constant 0 : index
    %c0_19 = arith.constant 0 : index
    %25 = vector.load %arg8[%c0_18, %c0_19] : memref<4x32xf32, #tpu.memory_space<vmem>>, vector<4x32xf32>
    %cst_20 = arith.constant dense<0.000000e+00> : vector<4x32xf32>
    %26 = tpu.matmul %25, %24, %cst_20 {dimension_numbers = #tpu.dot_dimension_numbers<[1], [1], [0], [0], [0, 0, 1, 0], [], []>} : vector<4x32xf32>, vector<32x32xf32>, vector<4x32xf32> -> vector<4x32xf32>
    %c0_21 = arith.constant 0 : index
    %c0_22 = arith.constant 0 : index
    %27 = vector.load %arg9[%c0_21, %c0_22] : memref<4x1xf32, #tpu.memory_space<vmem>>, vector<4x1xf32>
    %28 = vector.broadcast %27 : vector<4x1xf32> to vector<4x32xf32>
    %29 = arith.addf %26, %28 : vector<4x32xf32>
    %c0_23 = arith.constant 0 : index
    %c0_24 = arith.constant 0 : index
    %30 = vector.load %arg10[%c0_23, %c0_24] : memref<4x32xf32, #tpu.memory_space<vmem>>, vector<4x32xf32>
    tpu.vector_store %arg10[%c0_23, %c0_24], %29 {strides = array<i32>} : memref<4x32xf32, #tpu.memory_space<vmem>>, vector<4x32xf32>,
    return
  }
  func.func @transform_0(%arg0: i32) -> (i32, i32) {
    %c0_i32 = arith.constant 0 : i32
    %c0_i32_0 = arith.constant 0 : i32
    return %arg0, %c0_i32 : i32, i32
  }
  func.func @transform_1(%arg0: i32) -> (i32, i32) {
    %c0_i32 = arith.constant 0 : i32
    %c0_i32_0 = arith.constant 0 : i32
    return %arg0, %c0_i32 : i32, i32
  }
  func.func @transform_2(%arg0: i32) -> (i32, i32) {
    %c0_i32 = arith.constant 0 : i32
    %c0_i32_0 = arith.constant 0 : i32
    %c0_i32_1 = arith.constant 0 : i32
    return %c0_i32, %c0_i32_0 : i32, i32
  }
  func.func @transform_3(%arg0: i32) -> (i32, i32) {
    %c0_i32 = arith.constant 0 : i32
    %c0_i32_0 = arith.constant 0 : i32
    %c0_i32_1 = arith.constant 0 : i32
    return %c0_i32, %c0_i32_0 : i32, i32
  }
  func.func @transform_4(%arg0: i32) -> (i32, i32) {
    %c0_i32 = arith.constant 0 : i32
    %c0_i32_0 = arith.constant 0 : i32
    %c0_i32_1 = arith.constant 0 : i32
    return %c0_i32, %c0_i32_0 : i32, i32
  }
  func.func @transform_5(%arg0: i32) -> (i32, i32) {
    %c0_i32 = arith.constant 0 : i32
    %c0_i32_0 = arith.constant 0 : i32
    %c0_i32_1 = arith.constant 0 : i32
    return %c0_i32, %c0_i32_0 : i32, i32
  }
  func.func @transform_6(%arg0: i32) -> (i32, i32) {
    %c0_i32 = arith.constant 0 : i32
    %c0_i32_0 = arith.constant 0 : i32
    %c0_i32_1 = arith.constant 0 : i32
    return %c0_i32, %c0_i32_0 : i32, i32
  }
  func.func @transform_7(%arg0: i32) -> (i32, i32) {
    %c0_i32 = arith.constant 0 : i32
    %c0_i32_0 = arith.constant 0 : i32
    %c0_i32_1 = arith.constant 0 : i32
    return %c0_i32, %c0_i32_0 : i32, i32
  }
  func.func @transform_8(%arg0: i32) -> (i32, i32) {
    %c0_i32 = arith.constant 0 : i32
    %c0_i32_0 = arith.constant 0 : i32
    %c0_i32_1 = arith.constant 0 : i32
    return %c0_i32, %c0_i32_0 : i32, i32
  }
  func.func @transform_9(%arg0: i32) -> (i32, i32) {
    %c0_i32 = arith.constant 0 : i32
    %c0_i32_0 = arith.constant 0 : i32
    return %c0_i32, %arg0 : i32, i32
  }
}

</mosaic_0001>

<bundles_post_ra>
// kernel: knn_conv_unit.1
= control target key start
LH: loop header
LB: loop body
LE: loop exit
PB: predicated region body
PF: predicated region fallthrough
CT: control target
= control target key end

     0   :  { %vm57_vm0 = vcmask 1043456   ;;  %vm44_vm1 = vcmask 31744   ;;  %v1980_v44 = vmov 1966171168   ;;  %v511_v46 = vlaneseq  ;;  %s2433_s2 = inlined_call_operand.vmem [shape: f32[4,32], index: 2, kind: input, shape index: {}]   ;;  %s2434_s3 = inlined_call_operand.vmem [shape: f32[4,32], index: 3, kind: input, shape index: {}]   ;;  %s2435_s0 = inlined_call_operand.vmem [shape: f32[32,4], index: 0, kind: input, shape index: {}]   ;;  %s2436_s1 = inlined_call_operand.vmem [shape: f32[256,4], index: 1, kind: input, shape index: {}]   ;;  %s2437_s5 = inlined_call_operand.vmem [shape: f32[32,32], index: 5, kind: input, shape index: {}]   ;;  %s2438_s4 = inlined_call_operand.vmem [shape: f32[1,32], index: 4, kind: input, shape index: {}]   ;;  %s2439_s8 = inlined_call_operand.vmem [shape: f32[4,1], index: 8, kind: input, shape index: {}]   ;;  %s2440_s6 = inlined_call_operand.vmem [shape: f32[1,32], index: 6, kind: input, shape index: {}]   ;;  %s2441_s7 = inlined_call_operand.vmem [shape: f32[4,32], index: 7, kind: input, shape index: {}]   ;;  %s2442_s9 = inlined_call_operand.vmem [shape: f32[4,32], index: 9, kind: output, shape index: {}]  }
   0x1   :  { %v36_v0 = vld [vmem:[%s2433_s2] sm:$0xf]  ;;  %v33_v4 = vld [vmem:[%s2435_s0 + $0x8] sm:$0xff]  ;;  %v148_v6 = vld [vmem:[%s2436_s1 + $0x10] sm:$0xff]  ;;  %v509_v45 = vunpack.c.l.s4 %v1980_v44  ;;  %vm938_vm2 = vcmask 261120   ;;  %vm1982_vm3 = vmmov 0  }
   0x2   :  { %v178_v1 = vld [vmem:[%s2434_s3] sm:$0xf]  ;;  %1833 = vmatprep.subr.msk.mxu0 %vm57_vm0, %v36_v0  ;;  %v147_v5 = vld [vmem:[%s2436_s1 + $0x8] sm:$0xff]  ;;  %v149_v7 = vld [vmem:[%s2436_s1 + $0x18] sm:$0xff]  ;;  %v512_v48 = vshrl.u32 %v511_v46, 7  ;;  %vm1555_vm4 = vcmask 1041409  }
   0x3   :  { %v32_v2 = vld [vmem:[%s2435_s0] sm:$0xff]  ;;  %1841 = vmatprep.subr.msk.mxu1 %vm57_vm0, %v178_v1  ;;  %1834 = vmatpush3.msk.msra.mxu0 %vm57_vm0, %v36_v0  ;;  %v34_v9 = vld [vmem:[%s2435_s0 + $0x10] sm:$0xff]  ;;  %v35_v10 = vld [vmem:[%s2435_s0 + $0x18] sm:$0xff]  ;;  %v510_v47 = vunpack.c.0.s8 %v509_v45  ;;  %vm1557_vm5 = vcmask 1042434   ;;  %vm1559_vm6 = vcmask 1043459   ;;  %vm1561_vm7 = vcmask 1044484  }
   0x4   :  { %v146_v3 = vld [vmem:[%s2436_s1] sm:$0xff]  ;;  %1835 = vmatprep.mubr.msk.f32.mxu0 %vm44_vm1, %v32_v2  ;;  %1842 = vmatpush3.msk.msra.mxu1 %vm57_vm0, %v178_v1  ;;  %v151_v11 = vld [vmem:[%s2436_s1 + $0x28] sm:$0xff]  ;;  %v152_v12 = vld [vmem:[%s2436_s1 + $0x30] sm:$0xff]  ;;  %v2212_v61 = vsub.s32 0, %v512_v48  ;;  %vm1563_vm8 = vcmask 1045509   ;;  %vm1565_vm9 = vcmask 1046534  }
   0x5   :  { %1843 = vmatprep.mubr.msk.f32.mxu1 %vm44_vm1, %v146_v3  ;;  %1836 = vmatmul.mubr.msk.f32.vlgmr.msra.gmra.mrb[0].mxu0 %vm44_vm1, %v33_v4  ;;  %v150_v8 = vld [vmem:[%s2436_s1 + $0x20] sm:$0xff]  ;;  %v153_v13 = vld [vmem:[%s2436_s1 + $0x38] sm:$0xff]  ;;  %v155_v15 = vld [vmem:[%s2436_s1 + $0x48] sm:$0xff]  ;;  %v2206_v50 = vsub.s32 %v510_v47, %v512_v48  ;;  %vm1567_vm10 = vcmask 1047559   ;;  %vm1671_vm12 = vcmask 257024  }
   0x6   :  { %1844 = vmatmul.mubr.msk.f32.vlgmr.msra.gmra.mrb[0].mxu1 %vm44_vm1, %v147_v5  ;;  %1838 = vmatprep.mubr.msk.f32.mxu0 %vm44_vm1, %v34_v9  ;;  %v154_v14 = vld [vmem:[%s2436_s1 + $0x40] sm:$0xff]  ;;  %v156_v16 = vld [vmem:[%s2436_s1 + $0x50] sm:$0xff]  ;;  %v157_v17 = vld [vmem:[%s2436_s1 + $0x58] sm:$0xff] }
   0x7   :  { %1846 = vmatprep.mubr.msk.f32.mxu1 %vm44_vm1, %v148_v6  ;;  %v158_v18 = vld [vmem:[%s2436_s1 + $0x60] sm:$0xff]  ;;  %v159_v19 = vld [vmem:[%s2436_s1 + $0x68] sm:$0xff]  ;;  %v160_v20 = vld [vmem:[%s2436_s1 + $0x70] sm:$0xff] }
   0x8   :  { %v161_v21 = vld [vmem:[%s2436_s1 + $0x78] sm:$0xff]  ;;  %v162_v22 = vld [vmem:[%s2436_s1 + $0x80] sm:$0xff]  ;;  %v163_v23 = vld [vmem:[%s2436_s1 + $0x88] sm:$0xff] }
   0x9   :  { %1839 = vmatmul.mubr.msk.f32.gmra.mrb[2].mxu0 %vm44_vm1, %v35_v10  ;;  %v164_v24 = vld [vmem:[%s2436_s1 + $0x90] sm:$0xff]  ;;  %v165_v25 = vld [vmem:[%s2436_s1 + $0x98] sm:$0xff]  ;;  %v166_v26 = vld [vmem:[%s2436_s1 + $0xa0] sm:$0xff] }
   0xa   :  { %1847 = vmatmul.mubr.msk.f32.gmra.mrb[2].mxu1 %vm44_vm1, %v149_v7  ;;  %v167_v27 = vld [vmem:[%s2436_s1 + $0xa8] sm:$0xff]  ;;  %v168_v28 = vld [vmem:[%s2436_s1 + $0xb0] sm:$0xff]  ;;  %v169_v29 = vld [vmem:[%s2436_s1 + $0xb8] sm:$0xff] }
   0xb   :  { %1849 = vmatprep.mubr.msk.f32.mxu1 %vm44_vm1, %v150_v8  ;;  %v170_v30 = vld [vmem:[%s2436_s1 + $0xc0] sm:$0xff]  ;;  %v171_v31 = vld [vmem:[%s2436_s1 + $0xc8] sm:$0xff]  ;;  %v172_v32 = vld [vmem:[%s2436_s1 + $0xd0] sm:$0xff] }
   0xc   :  { %v173_v33 = vld [vmem:[%s2436_s1 + $0xd8] sm:$0xff]  ;;  %v174_v34 = vld [vmem:[%s2436_s1 + $0xe0] sm:$0xff]  ;;  %v175_v35 = vld [vmem:[%s2436_s1 + $0xe8] sm:$0xff] }
   0xd   :  { %v176_v36 = vld [vmem:[%s2436_s1 + $0xf0] sm:$0xff]  ;;  %v177_v37 = vld [vmem:[%s2436_s1 + $0xf8] sm:$0xff]  ;;  %v927_v38 = vld [vmem:[%s2437_s5] sm:$0xff] }
   0xe   :  { %1850 = vmatmul.mubr.msk.f32.gmra.mrb[4].mxu1 %vm44_vm1, %v151_v11  ;;  %v928_v39 = vld [vmem:[%s2437_s5 + $0x8] sm:$0xff]  ;;  %v929_v41 = vld [vmem:[%s2437_s5 + $0x10] sm:$0xff]  ;;  %v930_v42 = vld [vmem:[%s2437_s5 + $0x18] sm:$0xff] }
   0xf   :  { %1852 = vmatprep.mubr.msk.f32.mxu1 %vm44_vm1, %v152_v12  ;;  %v1958_v40 = vpack.c.bf16 %v928_v39, %v927_v38  ;;  %v1962_v43 = vpack.c.bf16 %v930_v42, %v929_v41  ;;  %v2204_v49 = vld [vmem:[%s2438_s4] ss:$0 sm:$0xff]  ;;  %vm2393_vm11 = vmpackc.low %vm938_vm2, %vm938_vm2 }
  0x11   :  { %1959 = vmatprep.subr.bf16.mxu0 %v1958_v40 }
  0x12   :  { %1853 = vmatmul.mubr.msk.f32.gmra.mrb[6].mxu1 %vm44_vm1, %v153_v13  ;;  %1961 = vmatpush3.bf16.msra.mxu0 %v1958_v40 }
  0x13   :  { %1855 = vmatprep.mubr.msk.f32.mxu1 %vm44_vm1, %v154_v14  ;;  %1963 = vmatprep.subr.bf16.mxu0 %v1962_v43 }
  0x16   :  { %1856 = vmatmul.mubr.msk.f32.gmra.mrb[8].mxu1 %vm44_vm1, %v155_v15  ;;  %1965 = vmatpush3.bf16.msra.mxu0 %v1962_v43 }
  0x17   :  { %1858 = vmatprep.mubr.msk.f32.mxu1 %vm44_vm1, %v156_v16 }
  0x1a   :  { %1859 = vmatmul.mubr.msk.f32.gmra.mrb[10].mxu1 %vm44_vm1, %v157_v17 }
  0x1b   :  { %1861 = vmatprep.mubr.msk.f32.mxu1 %vm44_vm1, %v158_v18 }
  0x1e   :  { %1862 = vmatmul.mubr.msk.f32.gmra.mrb[12].mxu1 %vm44_vm1, %v159_v19 }
  0x1f   :  { %1864 = vmatprep.mubr.msk.f32.mxu1 %vm44_vm1, %v160_v20 }
  0x22   :  { %1865 = vmatmul.mubr.msk.f32.gmra.mrb[14].mxu1 %vm44_vm1, %v161_v21 }
  0x23   :  { %1867 = vmatprep.mubr.msk.f32.mxu1 %vm44_vm1, %v162_v22 }
  0x26   :  { %1868 = vmatmul.mubr.msk.f32.gmra.mrb[16].mxu1 %vm44_vm1, %v163_v23 }
  0x27   :  { %1870 = vmatprep.mubr.msk.f32.mxu1 %vm44_vm1, %v164_v24 }
  0x2a   :  { %1871 = vmatmul.mubr.msk.f32.gmra.mrb[18].mxu1 %vm44_vm1, %v165_v25 }
  0x2b   :  { %1873 = vmatprep.mubr.msk.f32.mxu1 %vm44_vm1, %v166_v26 }
  0x2e   :  { %1874 = vmatmul.mubr.msk.f32.gmra.mrb[20].mxu1 %vm44_vm1, %v167_v27 }
  0x2f   :  { %1876 = vmatprep.mubr.msk.f32.mxu1 %vm44_vm1, %v168_v28 }
  0x32   :  { %1877 = vmatmul.mubr.msk.f32.gmra.mrb[22].mxu1 %vm44_vm1, %v169_v29 }
  0x33   :  { %1879 = vmatprep.mubr.msk.f32.mxu1 %vm44_vm1, %v170_v30 }
  0x36   :  { %1880 = vmatmul.mubr.msk.f32.gmra.mrb[24].mxu1 %vm44_vm1, %v171_v31 }
  0x37   :  { %1882 = vmatprep.mubr.msk.f32.mxu1 %vm44_vm1, %v172_v32 }
  0x3a   :  { %1883 = vmatmul.mubr.msk.f32.gmra.mrb[26].mxu1 %vm44_vm1, %v173_v33 }
  0x3b   :  { %1885 = vmatprep.mubr.msk.f32.mxu1 %vm44_vm1, %v174_v34 }
  0x3e   :  { %1886 = vmatmul.mubr.msk.f32.gmra.mrb[28].mxu1 %vm44_vm1, %v175_v35 }
  0x3f   :  { %1888 = vmatprep.mubr.msk.f32.mxu1 %vm44_vm1, %v176_v36 }
  0x42   :  { %1889 = vmatmul.mubr.msk.f32.gmra.mrb[30].mxu1 %vm44_vm1, %v177_v37 }
  0xd8   :  { %v1837_v51 = vpop.f32.mrb[0].mxu0 }
  0xd9   :  { %v1845_v52 = vpop.f32.mrb[0].mxu1  ;;  %v133_v53 = vadd.f32 %v1837_v51, %v2204_v49  ;;  %v127_v54 = vpop.f32.mrb[1].mxu0 }
  0xda   :  { %v344_v55 = vpop.f32.mrb[1].mxu1  ;;  %v128_v56 = vadd.f32 %v2204_v49, %v127_v54 }
  0xdb   :  { %v556_v57 = vcombine.high %v133_v53, %v133_v53  ;;  %v563_v58 = vrot.slane %v133_v53, %v2206_v50 }
  0xdc   :  { %v507_v59 = vcombine.high %v128_v56, %v128_v56  ;;  %v514_v60 = vrot.slane %v128_v56, %v2206_v50  ;;  %v2214_v63 = vpop.f32.mrb[2].mxu0 }
  0xdd   :  { %v1848_v62 = vpop.f32.mrb[2].mxu1  ;;  %v571_v0 = vcombine.high %v563_v58, %v563_v58  ;;  %v137_v2 = vpop.f32.mrb[3].mxu0  ;;  %v570_v6 = vrot.slane %v556_v57, %v2206_v50  ;;  %v579_v15 = vrot.slane %v563_v58, %v2206_v50 }
  0xde   :  { %v354_v1 = vpop.f32.mrb[3].mxu1  ;;  %v521_v3 = vrot.slane %v507_v59, %v2206_v50  ;;  %v522_v4 = vcombine.high %v514_v60, %v514_v60  ;;  %v530_v5 = vrot.slane %v514_v60, %v2206_v50  ;;  %v138_v45 = vadd.f32 %v2204_v49, %v137_v2 }
  0xdf   :  { %v593_v14 = vrot.slane %v571_v0, %v2206_v50  ;;  %v572_v23 = vcombine.high %v570_v6, %v570_v6  ;;  %v738_v43 = vrot.slane %v579_v15, %v2212_v61  ;;  %v601_v44 = vcombine.high %v579_v15, %v579_v15 }
  0xe0   :  { %v544_v7 = vrot.slane %v522_v4, %v2206_v50  ;;  %v706_v8 = vrot.slane %v530_v5, %v2212_v61  ;;  %v552_v9 = vcombine.high %v530_v5, %v530_v5  ;;  %v523_v11 = vcombine.high %v521_v3, %v521_v3 }
  0xe1   :  { %v1851_v10 = vpop.f32.mrb[4].mxu1  ;;  %v537_v13 = vrot.slane %v521_v3, %v2206_v50  ;;  %v742_v37 = vrot.slane %v593_v14, %v2212_v61  ;;  %v603_v41 = vcombine.high %v593_v14, %v593_v14  ;;  %v746_v57 = vrot.slane %v601_v44, %v2212_v61 }
  0xe2   :  { %v364_v12 = vpop.f32.mrb[5].mxu1  ;;  %v710_v16 = vrot.slane %v544_v7, %v2212_v61  ;;  %v863_v17 = vadd.f32 %v706_v8, %v344_v55  ;;  %v554_v18 = vcombine.high %v544_v7, %v544_v7  ;;  %v714_v19 = vrot.slane %v552_v9, %v2212_v61 }
  0xe3   :  { %v551_v20 = vrot.slane %v523_v11, %v2206_v50  ;;  %v722_v21 = vrot.slane %v537_v13, %v2212_v61  ;;  %v553_v22 = vcombine.high %v537_v13, %v537_v13  ;;  %v750_v54 = vrot.slane %v603_v41, %v2212_v61 }
  0xe4   :  { %v864_v24 = vadd.f32 %v1845_v52, %v710_v16  ;;  %v895_v25 = vmax.f32 %v863_v17, 0.0  ;;  %v718_v26 = vrot.slane %v554_v18, %v2212_v61  ;;  %v865_v27 = vadd.f32 %v714_v19, %v354_v1 }
  0xe5   :  { %v1854_v28 = vpop.f32.mrb[6].mxu1  ;;  %v726_v29 = vrot.slane %v551_v20, %v2212_v61  ;;  %v867_v30 = vadd.f32 %v722_v21, %v364_v12  ;;  %v555_v31 = vcombine.high %v551_v20, %v551_v20  ;;  %v730_v33 = vrot.slane %v553_v22, %v2212_v61 }
  0xe6   :  { %v374_v32 = vpop.f32.mrb[7].mxu1  ;;  %v896_v34 = vmax.f32 %v864_v24, 0.0  ;;  %v866_v35 = vadd.f32 %v1848_v62, %v718_v26  ;;  %v897_v36 = vmax.f32 %v865_v27, 0.0  ;;  %1899 = vmatprep.mubr.msk.f32.mxu0 %vm938_vm2, %v895_v25  ;;  %v600_v55 = vrot.slane %v572_v23, %v2206_v50 }
  0xe7   :  { %v868_v38 = vadd.f32 %v1851_v10, %v726_v29  ;;  %v734_v39 = vrot.slane %v555_v31, %v2212_v61  ;;  %v869_v40 = vadd.f32 %v730_v33, %v374_v32  ;;  %v899_v53 = vmax.f32 %v867_v30, 0.0 }
  0xe8   :  { %1900 = vmatmul.mubr.msk.f32.vlgmr.msra.gmra.mrb[4].mxu0 %vm938_vm2, %v896_v34  ;;  %v898_v51 = vmax.f32 %v866_v35, 0.0  ;;  %v586_v58 = vrot.slane %v570_v6, %v2206_v50  ;;  %v612_v59 = vrot.slane %v138_v45, %v2206_v50  ;;  %v605_v0 = vcombine.high %v138_v45, %v138_v45 }
  0xe9   :  { %v1857_v42 = vpop.f32.mrb[8].mxu1  ;;  %v870_v46 = vadd.f32 %v1854_v28, %v734_v39  ;;  %1902 = vmatprep.mubr.msk.f32.mxu0 %vm938_vm2, %v897_v36  ;;  %v900_v1 = vmax.f32 %v868_v38, 0.0  ;;  %v901_v4 = vmax.f32 %v869_v40, 0.0  ;;  %v758_v5 = vrot.slane %v600_v55, %v2212_v61 }
  0xea   :  { %v872_v47 = vadd.f32 %v1857_v42, %v742_v37  ;;  %v384_v48 = vpop.f32.mrb[9].mxu1  ;;  %v620_v3 = vcombine.high %v612_v59, %v612_v59  ;;  %v604_v7 = vcombine.high %v600_v55, %v600_v55  ;;  %v754_v9 = vrot.slane %v586_v58, %v2212_v61 }
  0xeb   :  { %v871_v52 = vadd.f32 %v738_v43, %v384_v48  ;;  %v602_v6 = vcombine.high %v586_v58, %v586_v58  ;;  %v619_v12 = vrot.slane %v605_v0, %v2206_v50  ;;  %v902_v14 = vmax.f32 %v870_v46, 0.0 }
  0xec   :  { %1903 = vmatmul.mubr.msk.f32.gmra.mrb[6].mxu0 %vm938_vm2, %v898_v51  ;;  %v642_v13 = vrot.slane %v620_v3, %v2206_v50  ;;  %v628_v16 = vrot.slane %v612_v59, %v2206_v50  ;;  %v766_v18 = vrot.slane %v604_v7, %v2212_v61  ;;  %v904_v26 = vmax.f32 %v872_v47, 0.0 }
  0xed   :  { %v1860_v56 = vpop.f32.mrb[10].mxu1  ;;  %1905 = vmatprep.mubr.msk.f32.mxu0 %vm938_vm2, %v899_v53  ;;  %v903_v17 = vmax.f32 %v871_v52, 0.0  ;;  %v762_v20 = vrot.slane %v602_v6, %v2212_v61  ;;  %v621_v25 = vcombine.high %v619_v12, %v619_v12  ;;  %v143_v31 = vadd.f32 %v2214_v63, %v2204_v49 }
  0xee   :  { %v874_v60 = vadd.f32 %v1860_v56, %v750_v54  ;;  %v394_v62 = vpop.f32.mrb[11].mxu1  ;;  %v774_v23 = vrot.slane %v642_v13, %v2212_v61  ;;  %v652_v24 = vcombine.high %v642_v13, %v642_v13  ;;  %v770_v28 = vrot.slane %v628_v16, %v2212_v61 }
  0xef   :  { %v873_v2 = vadd.f32 %v746_v57, %v394_v62  ;;  %v650_v29 = vcombine.high %v628_v16, %v628_v16  ;;  %v649_v36 = vrot.slane %v621_v25, %v2206_v50  ;;  %v635_v40 = vrot.slane %v619_v12, %v2206_v50 }
  0xf0   :  { %1906 = vmatmul.mubr.msk.f32.gmra.mrb[8].mxu0 %vm938_vm2, %v900_v1  ;;  %v782_v35 = vrot.slane %v652_v24, %v2212_v61  ;;  %v906_v37 = vmax.f32 %v874_v60, 0.0  ;;  %v661_v49 = vrot.slane %v143_v31, %v2206_v50  ;;  %v654_v53 = vcombine.high %v143_v31, %v143_v31 }
  0xf1   :  { %v1863_v8 = vpop.f32.mrb[12].mxu1  ;;  %1908 = vmatprep.mubr.msk.f32.mxu0 %vm938_vm2, %v901_v4  ;;  %v905_v30 = vmax.f32 %v873_v2, 0.0  ;;  %v778_v39 = vrot.slane %v650_v29, %v2212_v61  ;;  %v790_v44 = vrot.slane %v649_v36, %v2212_v61  ;;  %v653_v45 = vcombine.high %v649_v36, %v649_v36 }
  0xf2   :  { %v876_v10 = vadd.f32 %v1863_v8, %v758_v5  ;;  %v404_v11 = vpop.f32.mrb[13].mxu1  ;;  %v786_v48 = vrot.slane %v635_v40, %v2212_v61  ;;  %v651_v51 = vcombine.high %v635_v40, %v635_v40  ;;  %v669_v54 = vcombine.high %v661_v49, %v661_v49 }
  0xf3   :  { %v875_v15 = vadd.f32 %v754_v9, %v404_v11  ;;  %v798_v59 = vrot.slane %v653_v45, %v2212_v61  ;;  %v668_v1 = vrot.slane %v654_v53, %v2206_v50  ;;  %v677_v4 = vrot.slane %v661_v49, %v2206_v50 }
  0xf4   :  { %1909 = vmatmul.mubr.msk.f32.gmra.mrb[10].mxu0 %vm938_vm2, %v902_v14  ;;  %v908_v46 = vmax.f32 %v876_v10, 0.0  ;;  %v794_v0 = vrot.slane %v651_v51, %v2212_v61  ;;  %v691_v2 = vrot.slane %v669_v54, %v2206_v50  ;;  %v1983_v53 = vmov 0.0  }
  0xf5   :  { %v1866_v19 = vpop.f32.mrb[14].mxu1  ;;  %1911 = vmatprep.mubr.msk.f32.mxu0 %vm938_vm2, %v903_v17  ;;  %v907_v41 = vmax.f32 %v875_v15, 0.0  ;;  %v670_v12 = vcombine.high %v668_v1, %v668_v1  ;;  %v802_v14 = vrot.slane %v677_v4, %v2212_v61  ;;  %v699_v15 = vcombine.high %v677_v4, %v677_v4  ;;  %1955 = vmatprep.mubr.msk.f32.mxu1 %vm1982_vm3, %v1983_v53 }
  0xf6   :  { %v878_v21 = vadd.f32 %v1866_v19, %v766_v18  ;;  %v414_v22 = vpop.f32.mrb[15].mxu1  ;;  %v806_v10 = vrot.slane %v691_v2, %v2212_v61  ;;  %v701_v11 = vcombine.high %v691_v2, %v691_v2  ;;  %v684_v25 = vrot.slane %v668_v1, %v2206_v50 }
  0xf7   :  { %v877_v27 = vadd.f32 %v762_v20, %v414_v22  ;;  %v698_v22 = vrot.slane %v670_v12, %v2206_v50  ;;  %v810_v24 = vrot.slane %v699_v15, %v2212_v61  ;;  %v1984_v54 = vmov 0  }
  0xf8   :  { %1912 = vmatmul.mubr.msk.f32.gmra.mrb[12].mxu0 %vm938_vm2, %v904_v26  ;;  %v910_v60 = vmax.f32 %v878_v21, 0.0  ;;  %v814_v21 = vrot.slane %v701_v11, %v2212_v61  ;;  %1979 = vset.pattern.permute.xlu0 %v1984_v54 }
  0xf9   :  { %v1869_v32 = vpop.f32.mrb[16].mxu1  ;;  %1914 = vmatprep.mubr.msk.f32.mxu0 %vm938_vm2, %v905_v30  ;;  %v909_v52 = vmax.f32 %v877_v27, 0.0  ;;  %v822_v31 = vrot.slane %v698_v22, %v2212_v61 }
  0xfa   :  { %v880_v33 = vadd.f32 %v1869_v32, %v774_v23  ;;  %v424_v34 = vpop.f32.mrb[17].mxu1  ;;  %v702_v32 = vcombine.high %v698_v22, %v698_v22 }
  0xfb   :  { %v879_v38 = vadd.f32 %v770_v28, %v424_v34  ;;  %v818_v34 = vrot.slane %v684_v25, %v2212_v61 }
  0xfc   :  { %1915 = vmatmul.mubr.msk.f32.gmra.mrb[14].mxu0 %vm938_vm2, %v906_v37  ;;  %v912_v8 = vmax.f32 %v880_v33, 0.0  ;;  %v830_v40 = vrot.slane %v702_v32, %v2212_v61 }
  0xfd   :  { %v1872_v63 = vpop.f32.mrb[18].mxu1  ;;  %1917 = vmatprep.mubr.msk.f32.mxu0 %vm938_vm2, %v907_v41  ;;  %v911_v56 = vmax.f32 %v879_v38, 0.0 }
  0xfe   :  { %v882_v42 = vadd.f32 %v1872_v63, %v782_v35  ;;  %v434_v43 = vpop.f32.mrb[19].mxu1  ;;  %v700_v35 = vcombine.high %v684_v25, %v684_v25 }
  0xff   :  { %v881_v47 = vadd.f32 %v778_v39, %v434_v43 }
 0x100   :  { %1918 = vmatmul.mubr.msk.f32.gmra.mrb[16].mxu0 %vm938_vm2, %v908_v46  ;;  %v914_v18 = vmax.f32 %v882_v42, 0.0  ;;  %v826_v49 = vrot.slane %v700_v35, %v2212_v61 }
 0x101   :  { %v1875_v55 = vpop.f32.mrb[20].mxu1  ;;  %1920 = vmatprep.mubr.msk.f32.mxu0 %vm938_vm2, %v909_v52  ;;  %v913_v6 = vmax.f32 %v881_v47, 0.0  ;;  %v1981_v52 = vmov 0.0|0.0  }
 0x102   :  { %v884_v57 = vadd.f32 %v1875_v55, %v790_v44  ;;  %v444_v58 = vpop.f32.mrb[21].mxu1  ;;  %1966 = vmatprep.subr.bf16.mxu1 %v1981_v52  ;;  %v1517_v55 = vld [vmem:[%s2439_s8] sm:$0xf] }
 0x103   :  { %v883_v62 = vadd.f32 %v786_v48, %v444_v58  ;;  %1520 = vperm.xlu0 %1979, %v1517_v55  }
 0x104   :  { %1921 = vmatmul.mubr.msk.f32.gmra.mrb[18].mxu0 %vm938_vm2, %v910_v60  ;;  %v916_v28 = vmax.f32 %v884_v57, 0.0 }
 0x105   :  { %v1878_v3 = vpop.f32.mrb[22].mxu1  ;;  %1923 = vmatprep.mubr.msk.f32.mxu0 %vm938_vm2, %v911_v56  ;;  %v915_v20 = vmax.f32 %v883_v62, 0.0  ;;  %v2312_v56 = vld [vmem:[%s2440_s6] ss:$0 sm:$0xff] }
 0x106   :  { %v886_v5 = vadd.f32 %v1878_v3, %v798_v59  ;;  %v454_v7 = vpop.f32.mrb[23].mxu1 }
 0x107   :  { %v885_v9 = vadd.f32 %v794_v0, %v454_v7 }
 0x108   :  { %1924 = vmatmul.mubr.msk.f32.gmra.mrb[20].mxu0 %vm938_vm2, %v912_v8  ;;  %v918_v50 = vmax.f32 %v886_v5, 0.0 }
 0x109   :  { %v1881_v13 = vpop.f32.mrb[24].mxu1  ;;  %1926 = vmatprep.mubr.msk.f32.mxu0 %vm938_vm2, %v913_v6  ;;  %v917_v30 = vmax.f32 %v885_v9, 0.0 }
 0x10a   :  { %v888_v16 = vadd.f32 %v1881_v13, %v806_v10  ;;  %v464_v17 = vpop.f32.mrb[25].mxu1 }
 0x10b   :  { %v887_v19 = vadd.f32 %v802_v14, %v464_v17 }
 0x10c   :  { %1927 = vmatmul.mubr.msk.f32.gmra.mrb[22].mxu0 %vm938_vm2, %v914_v18  ;;  %v920_v43 = vmax.f32 %v888_v16, 0.0 }
 0x10d   :  { %v1884_v23 = vpop.f32.mrb[26].mxu1  ;;  %1929 = vmatprep.mubr.msk.f32.mxu0 %vm938_vm2, %v915_v20  ;;  %v919_v39 = vmax.f32 %v887_v19, 0.0 }
 0x10e   :  { %v890_v26 = vadd.f32 %v1884_v23, %v814_v21  ;;  %v474_v27 = vpop.f32.mrb[27].mxu1 }
 0x10f   :  { %v889_v29 = vadd.f32 %v810_v24, %v474_v27 }
 0x110   :  { %1930 = vmatmul.mubr.msk.f32.gmra.mrb[24].mxu0 %vm938_vm2, %v916_v28  ;;  %v922_v46 = vmax.f32 %v890_v26, 0.0 }
 0x111   :  { %v1887_v33 = vpop.f32.mrb[28].mxu1  ;;  %1932 = vmatprep.mubr.msk.f32.mxu0 %vm938_vm2, %v917_v30  ;;  %v921_v45 = vmax.f32 %v889_v29, 0.0 }
 0x112   :  { %v892_v36 = vadd.f32 %v1887_v33, %v822_v31  ;;  %v484_v37 = vpop.f32.mrb[29].mxu1 }
 0x113   :  { %v891_v38 = vadd.f32 %v818_v34, %v484_v37 }
 0x114   :  { %1933 = vmatmul.mubr.msk.f32.gmra.mrb[26].mxu0 %vm938_vm2, %v918_v50  ;;  %v924_v48 = vmax.f32 %v892_v36, 0.0 }
 0x115   :  { %v1890_v41 = vpop.f32.mrb[30].mxu1  ;;  %1935 = vmatprep.mubr.msk.f32.mxu0 %vm938_vm2, %v919_v39  ;;  %v923_v47 = vmax.f32 %v891_v38, 0.0 }
 0x116   :  { %v894_v63 = vadd.f32 %v1890_v41, %v830_v40  ;;  %v494_v42 = vpop.f32.mrb[31].mxu1 }
 0x117   :  { %v893_v44 = vadd.f32 %v826_v49, %v494_v42 }
 0x118   :  { %1936 = vmatmul.mubr.msk.f32.gmra.mrb[28].mxu0 %vm938_vm2, %v920_v43  ;;  %v926_v61 = vmax.f32 %v894_v63, 0.0 }
 0x119   :  { %1938 = vmatprep.mubr.msk.f32.mxu0 %vm938_vm2, %v921_v45  ;;  %v925_v51 = vmax.f32 %v893_v44, 0.0 }
 0x11c   :  { %1939 = vmatmul.mubr.msk.f32.gmra.mrb[30].mxu0 %vm938_vm2, %v922_v46 }
 0x11d   :  { %1941 = vmatprep.mubr.msk.f32.mxu0 %vm938_vm2, %v923_v47 }
 0x120   :  { %1942 = vmatmul.mubr.msk.f32.gmra.mrb[32].mxu0 %vm938_vm2, %v924_v48 }
 0x121   :  { %1944 = vmatprep.mubr.msk.f32.mxu0 %vm938_vm2, %v925_v51 }
 0x124   :  { %1945 = vmatmul.mubr.msk.f32.gmra.mrb[34].mxu0 %vm938_vm2, %v926_v61 }
 0x1bb   :  { %v1901_v57 = vpop.f32.mrb[4].mxu0 }
 0x1bc   :  { %v1107_v58 = vadd.f32 %v1901_v57, %v2312_v56  ;;  %v1101_v59 = vpop.f32.mrb[5].mxu0 }
 0x1bd   :  { %v1102_v60 = vadd.f32 %v2312_v56, %v1101_v59 }
 0x1be   :  { %v1261_v62 = vmax.f32 %v1107_v58, 0.0 }
 0x1bf   :  { %v1260_v0 = vmax.f32 %v1102_v60, 0.0  ;;  %v1904_v1 = vpop.f32.mrb[6].mxu0 }
 0x1c0   :  { %v1299_v2 = vsel %vm938_vm2, %v1261_v62, -inf  ;;  %v1117_v3 = vadd.f32 %v1904_v1, %v2312_v56  ;;  %v1111_v4 = vpop.f32.mrb[7].mxu0 }
 0x1c1   :  { %v1300_v5 = vrot.slane %v1299_v2, 4  ;;  %v1292_v7 = vsel %vm938_vm2, %v1260_v0, -inf  ;;  %v1112_v8 = vadd.f32 %v2312_v56, %v1111_v4 }
 0x1c2   :  { %v1293_v9 = vrot.slane %v1292_v7, 4  ;;  %v1263_v6 = vmax.f32 %v1117_v3, 0.0 }
 0x1c3   :  { %v1301_v10 = vmax.f32 %v1299_v2, %v1300_v5  ;;  %v1262_v11 = vmax.f32 %v1112_v8, 0.0  ;;  %v1907_v12 = vpop.f32.mrb[8].mxu0 }
 0x1c4   :  { %v1294_v13 = vmax.f32 %v1292_v7, %v1293_v9  ;;  %v1313_v14 = vsel %vm938_vm2, %v1263_v6, -inf  ;;  %v1127_v15 = vadd.f32 %v1907_v12, %v2312_v56  ;;  %v1121_v16 = vpop.f32.mrb[9].mxu0 }
 0x1c5   :  { %v1302_v17 = vrot.slane %v1301_v10, 2  ;;  %v1314_v18 = vrot.slane %v1313_v14, 4  ;;  %v1306_v19 = vsel %vm938_vm2, %v1262_v11, -inf  ;;  %v1122_v20 = vadd.f32 %v2312_v56, %v1121_v16 }
 0x1c6   :  { %v1295_v21 = vrot.slane %v1294_v13, 2  ;;  %v1307_v22 = vrot.slane %v1306_v19, 4  ;;  %v1265_v23 = vmax.f32 %v1127_v15, 0.0 }
 0x1c7   :  { %v1303_v24 = vmax.f32 %v1301_v10, %v1302_v17  ;;  %v1315_v25 = vmax.f32 %v1313_v14, %v1314_v18  ;;  %v1264_v26 = vmax.f32 %v1122_v20, 0.0  ;;  %v1910_v27 = vpop.f32.mrb[10].mxu0 }
 0x1c8   :  { %v1296_v28 = vmax.f32 %v1294_v13, %v1295_v21  ;;  %v1308_v29 = vmax.f32 %v1306_v19, %v1307_v22  ;;  %v1327_v30 = vsel %vm938_vm2, %v1265_v23, -inf  ;;  %v1137_v31 = vadd.f32 %v1910_v27, %v2312_v56  ;;  %v1131_v32 = vpop.f32.mrb[11].mxu0 }
 0x1c9   :  { %v1304_v33 = vrot.slane %v1303_v24, 1  ;;  %v1316_v34 = vrot.slane %v1315_v25, 2  ;;  %v1328_v35 = vrot.slane %v1327_v30, 4  ;;  %v1320_v36 = vsel %vm938_vm2, %v1264_v26, -inf }
 0x1ca   :  { %v1297_v37 = vrot.slane %v1296_v28, 1  ;;  %v1309_v50 = vrot.slane %v1308_v29, 2  ;;  %v1321_v38 = vrot.slane %v1320_v36, 4  ;;  %v1267_v39 = vmax.f32 %v1137_v31, 0.0 }
 0x1cb   :  { %v1305_v40 = vmax.f32 %v1303_v24, %v1304_v33  ;;  %v1317_v41 = vmax.f32 %v1315_v25, %v1316_v34  ;;  %v1329_v49 = vmax.f32 %v1327_v30, %v1328_v35  ;;  %v1132_v63 = vadd.f32 %v2312_v56, %v1131_v32  ;;  %v1913_v42 = vpop.f32.mrb[12].mxu0 }
 0x1cc   :  { %v1298_v43 = vmax.f32 %v1296_v28, %v1297_v37  ;;  %v1310_v44 = vmax.f32 %v1308_v29, %v1309_v50  ;;  %v1322_v45 = vmax.f32 %v1320_v36, %v1321_v38  ;;  %v1341_v46 = vsel %vm938_vm2, %v1267_v39, -inf  ;;  %v1141_v47 = vpop.f32.mrb[13].mxu0 }
 0x1cd   :  { %v1318_v48 = vrot.slane %v1317_v41, 1  ;;  %v1330_v51 = vrot.slane %v1329_v49, 2  ;;  %v1342_v61 = vrot.slane %v1341_v46, 4  ;;  %v1266_v53 = vmax.f32 %v1132_v63, 0.0 }
 0x1ce   :  { %v1556_v54 = vsel %vm1555_vm4, %v1305_v40, %v1298_v43  ;;  %v1311_v55 = vrot.slane %v1310_v44, 1  ;;  %v1323_v57 = vrot.slane %v1322_v45, 2  ;;  %v1147_v58 = vadd.f32 %v1913_v42, %v2312_v56 }
 0x1cf   :  { %v1319_v59 = vmax.f32 %v1317_v41, %v1318_v48  ;;  %v1331_v60 = vmax.f32 %v1329_v49, %v1330_v51  ;;  %v1343_v62 = vmax.f32 %v1341_v46, %v1342_v61  ;;  %v1334_v0 = vsel %vm938_vm2, %v1266_v53, -inf  ;;  %v1916_v1 = vpop.f32.mrb[14].mxu0 }
 0x1d0   :  { %v1312_v2 = vmax.f32 %v1310_v44, %v1311_v55  ;;  %v1324_v3 = vmax.f32 %v1322_v45, %v1323_v57  ;;  %v1335_v4 = vrot.slane %v1334_v0, 4  ;;  %v1269_v5 = vmax.f32 %v1147_v58, 0.0  ;;  %v1151_v7 = vpop.f32.mrb[15].mxu0 }
 0x1d1   :  { %v1332_v8 = vrot.slane %v1331_v60, 1  ;;  %v1344_v9 = vrot.slane %v1343_v62, 2  ;;  %v1142_v6 = vadd.f32 %v2312_v56, %v1141_v47  ;;  %v1157_v10 = vadd.f32 %v1916_v1, %v2312_v56 }
 0x1d2   :  { %v1558_v11 = vsel %vm1557_vm5, %v1312_v2, %v1556_v54  ;;  %v1325_v12 = vrot.slane %v1324_v3, 1  ;;  %v1336_v13 = vmax.f32 %v1334_v0, %v1335_v4  ;;  %v1355_v14 = vsel %vm938_vm2, %v1269_v5, -inf }
 0x1d3   :  { %v1333_v15 = vmax.f32 %v1331_v60, %v1332_v8  ;;  %v1560_v16 = vsel %vm1559_vm6, %v1319_v59, %v1558_v11  ;;  %v1345_v17 = vmax.f32 %v1343_v62, %v1344_v9  ;;  %v1356_v18 = vrot.slane %v1355_v14, 4  ;;  %v1919_v19 = vpop.f32.mrb[16].mxu0 }
 0x1d4   :  { %v1326_v20 = vmax.f32 %v1324_v3, %v1325_v12  ;;  %v1337_v21 = vrot.slane %v1336_v13, 2  ;;  %v1268_v22 = vmax.f32 %v1142_v6, 0.0  ;;  %v1271_v23 = vmax.f32 %v1157_v10, 0.0  ;;  %v1161_v24 = vpop.f32.mrb[17].mxu0 }
 0x1d5   :  { %v1346_v25 = vrot.slane %v1345_v17, 1  ;;  %v1357_v26 = vmax.f32 %v1355_v14, %v1356_v18  ;;  %v1152_v27 = vadd.f32 %v2312_v56, %v1151_v7  ;;  %v1167_v28 = vadd.f32 %v1919_v19, %v2312_v56 }
 0x1d6   :  { %v1562_v29 = vsel %vm1561_vm7, %v1326_v20, %v1560_v16  ;;  %v1338_v30 = vmax.f32 %v1336_v13, %v1337_v21  ;;  %v1348_v31 = vsel %vm938_vm2, %v1268_v22, -inf  ;;  %v1369_v32 = vsel %vm938_vm2, %v1271_v23, -inf }
 0x1d7   :  { %v2342_v33 = vmax.f32 %v1345_v17, %v1346_v25  ;;  %v1564_v34 = vsel %vm1563_vm8, %v1333_v15, %v1562_v29  ;;  %v1358_v35 = vrot.slane %v1357_v26, 2  ;;  %v1349_v36 = vrot.slane %v1348_v31, 4  ;;  %v1922_v37 = vpop.f32.mrb[18].mxu0 }
 0x1d8   :  { %v1339_v50 = vrot.slane %v1338_v30, 1  ;;  %v1370_v38 = vrot.slane %v1369_v32, 4  ;;  %v1270_v39 = vmax.f32 %v1152_v27, 0.0  ;;  %v1273_v40 = vmax.f32 %v1167_v28, 0.0  ;;  %v1171_v41 = vpop.f32.mrb[19].mxu0 }
 0x1d9   :  { %v1359_v49 = vmax.f32 %v1357_v26, %v1358_v35  ;;  %v1350_v63 = vmax.f32 %v1348_v31, %v1349_v36  ;;  %v1162_v42 = vadd.f32 %v2312_v56, %v1161_v24  ;;  %v1177_v43 = vadd.f32 %v1922_v37, %v2312_v56 }
 0x1da   :  { %v1340_v44 = vmax.f32 %v1338_v30, %v1339_v50  ;;  %v1371_v45 = vmax.f32 %v1369_v32, %v1370_v38  ;;  %v1362_v46 = vsel %vm938_vm2, %v1270_v39, -inf  ;;  %v1383_v47 = vsel %vm938_vm2, %v1273_v40, -inf }
 0x1db   :  { %v1360_v48 = vrot.slane %v1359_v49, 1  ;;  %v1351_v51 = vrot.slane %v1350_v63, 2  ;;  %v1363_v61 = vrot.slane %v1362_v46, 4  ;;  %v1384_v53 = vrot.slane %v1383_v47, 4  ;;  %v1925_v54 = vpop.f32.mrb[20].mxu0 }
 0x1dc   :  { %v2350_v55 = vsel %vm1565_vm9, %v1340_v44, %v1564_v34  ;;  %v1372_v57 = vrot.slane %v1371_v45, 2  ;;  %v1272_v58 = vmax.f32 %v1162_v42, 0.0  ;;  %v1275_v59 = vmax.f32 %v1177_v43, 0.0  ;;  %v1181_v60 = vpop.f32.mrb[21].mxu0 }
 0x1dd   :  { %v1361_v62 = vmax.f32 %v1359_v49, %v1360_v48  ;;  %v1352_v0 = vmax.f32 %v1350_v63, %v1351_v51  ;;  %v1364_v1 = vmax.f32 %v1362_v46, %v1363_v61  ;;  %v1385_v2 = vmax.f32 %v1383_v47, %v1384_v53 }
 0x1de   :  { %v1373_v3 = vmax.f32 %v1371_v45, %v1372_v57  ;;  %v1376_v4 = vsel %vm938_vm2, %v1272_v58, -inf  ;;  %v1397_v5 = vsel %vm938_vm2, %v1275_v59, -inf  ;;  %v1172_v7 = vadd.f32 %v2312_v56, %v1171_v41 }
 0x1df   :  { %v1353_v8 = vrot.slane %v1352_v0, 1  ;;  %v1365_v9 = vrot.slane %v1364_v1, 2  ;;  %v1386_v6 = vrot.slane %v1385_v2, 2  ;;  %v1377_v10 = vrot.slane %v1376_v4, 4  ;;  %v1928_v11 = vpop.f32.mrb[22].mxu0 }
 0x1e0   :  { %v1374_v12 = vrot.slane %v1373_v3, 1  ;;  %v1398_v13 = vrot.slane %v1397_v5, 4  ;;  %v1274_v14 = vmax.f32 %v1172_v7, 0.0  ;;  %v1187_v15 = vadd.f32 %v1925_v54, %v2312_v56  ;;  %v1191_v16 = vpop.f32.mrb[23].mxu0 }
 0x1e1   :  { %v1354_v17 = vmax.f32 %v1352_v0, %v1353_v8  ;;  %v1366_v18 = vmax.f32 %v1364_v1, %v1365_v9  ;;  %v1387_v19 = vmax.f32 %v1385_v2, %v1386_v6  ;;  %v1378_v20 = vmax.f32 %v1376_v4, %v1377_v10 }
 0x1e2   :  { %v1375_v21 = vmax.f32 %v1373_v3, %v1374_v12  ;;  %v1399_v22 = vmax.f32 %v1397_v5, %v1398_v13  ;;  %v1390_v23 = vsel %vm938_vm2, %v1274_v14, -inf  ;;  %v1277_v24 = vmax.f32 %v1187_v15, 0.0 }
 0x1e3   :  { %v1569_v25 = vsel %vm1555_vm4, %v1361_v62, %v1354_v17  ;;  %v1367_v26 = vrot.slane %v1366_v18, 1  ;;  %v1388_v27 = vrot.slane %v1387_v19, 1  ;;  %v1379_v28 = vrot.slane %v1378_v20, 2  ;;  %v1931_v29 = vpop.f32.mrb[24].mxu0 }
 0x1e4   :  { %v1400_v30 = vrot.slane %v1399_v22, 2  ;;  %v1391_v31 = vrot.slane %v1390_v23, 4  ;;  %v1411_v32 = vsel %vm938_vm2, %v1277_v24, -inf  ;;  %v1182_v34 = vadd.f32 %v2312_v56, %v1181_v60  ;;  %v1201_v35 = vpop.f32.mrb[25].mxu0 }
 0x1e5   :  { %v1368_v36 = vmax.f32 %v1366_v18, %v1367_v26  ;;  %v1389_v37 = vmax.f32 %v1387_v19, %v1388_v27  ;;  %v1380_v50 = vmax.f32 %v1378_v20, %v1379_v28  ;;  %v1412_v38 = vrot.slane %v1411_v32, 4 }
 0x1e6   :  { %v1401_v39 = vmax.f32 %v1399_v22, %v1400_v30  ;;  %v1392_v40 = vmax.f32 %v1390_v23, %v1391_v31  ;;  %v1276_v41 = vmax.f32 %v1182_v34, 0.0  ;;  %v1197_v49 = vadd.f32 %v1928_v11, %v2312_v56 }
 0x1e7   :  { %v1570_v63 = vsel %vm1557_vm5, %v1368_v36, %v1569_v25  ;;  %v1381_v42 = vrot.slane %v1380_v50, 1  ;;  %v1413_v43 = vmax.f32 %v1411_v32, %v1412_v38  ;;  %v1192_v44 = vadd.f32 %v2312_v56, %v1191_v16  ;;  %v1934_v45 = vpop.f32.mrb[26].mxu0 }
 0x1e8   :  { %v1571_v46 = vsel %vm1559_vm6, %v1375_v21, %v1570_v63  ;;  %v1402_v47 = vrot.slane %v1401_v39, 1  ;;  %v1393_v48 = vrot.slane %v1392_v40, 2  ;;  %v1404_v51 = vsel %vm938_vm2, %v1276_v41, -inf  ;;  %v1211_v61 = vpop.f32.mrb[27].mxu0 }
 0x1e9   :  { %v1382_v53 = vmax.f32 %v1380_v50, %v1381_v42  ;;  %v1414_v54 = vrot.slane %v1413_v43, 2  ;;  %v1405_v57 = vrot.slane %v1404_v51, 4  ;;  %v1279_v58 = vmax.f32 %v1197_v49, 0.0 }
 0x1ea   :  { %v2365_v59 = vmax.f32 %v1401_v39, %v1402_v47  ;;  %v1394_v60 = vmax.f32 %v1392_v40, %v1393_v48  ;;  %v1278_v62 = vmax.f32 %v1192_v44, 0.0  ;;  %v1207_v0 = vadd.f32 %v1931_v29, %v2312_v56 }
 0x1eb   :  { %v1572_v1 = vsel %vm1561_vm7, %v1382_v53, %v1571_v46  ;;  %v1415_v2 = vmax.f32 %v1413_v43, %v1414_v54  ;;  %v1406_v3 = vmax.f32 %v1404_v51, %v1405_v57  ;;  %v1425_v4 = vsel %vm938_vm2, %v1279_v58, -inf  ;;  %v1937_v5 = vpop.f32.mrb[28].mxu0 }
 0x1ec   :  { %v1395_v7 = vrot.slane %v1394_v60, 1  ;;  %v1573_v8 = vsel %vm1563_vm8, %v1389_v37, %v1572_v1  ;;  %v1426_v9 = vrot.slane %v1425_v4, 4  ;;  %v1418_v6 = vsel %vm938_vm2, %v1278_v62, -inf  ;;  %v1221_v10 = vpop.f32.mrb[29].mxu0 }
 0x1ed   :  { %v1416_v11 = vrot.slane %v1415_v2, 1  ;;  %v1407_v12 = vrot.slane %v1406_v3, 2  ;;  %v1419_v13 = vrot.slane %v1418_v6, 4  ;;  %v1281_v14 = vmax.f32 %v1207_v0, 0.0 }
 0x1ee   :  { %v1396_v15 = vmax.f32 %v1394_v60, %v1395_v7  ;;  %v1427_v16 = vmax.f32 %v1425_v4, %v1426_v9  ;;  %v1202_v17 = vadd.f32 %v2312_v56, %v1201_v35  ;;  %v1217_v18 = vadd.f32 %v1934_v45, %v2312_v56 }
 0x1ef   :  { %v1417_v19 = vmax.f32 %v1415_v2, %v1416_v11  ;;  %v1408_v20 = vmax.f32 %v1406_v3, %v1407_v12  ;;  %v1420_v21 = vmax.f32 %v1418_v6, %v1419_v13  ;;  %v1439_v22 = vsel %vm938_vm2, %v1281_v14, -inf  ;;  %v1940_v23 = vpop.f32.mrb[30].mxu0 }
 0x1f0   :  { %v1574_v24 = vsel %vm1565_vm9, %v1396_v15, %v1573_v8  ;;  %v1428_v25 = vrot.slane %v1427_v16, 2  ;;  %v1440_v26 = vrot.slane %v1439_v22, 4  ;;  %v1280_v27 = vmax.f32 %v1202_v17, 0.0  ;;  %v1231_v28 = vpop.f32.mrb[31].mxu0 }
 0x1f1   :  { %v1409_v29 = vrot.slane %v1408_v20, 1  ;;  %v1421_v30 = vrot.slane %v1420_v21, 2  ;;  %v1283_v31 = vmax.f32 %v1217_v18, 0.0  ;;  %v1212_v32 = vadd.f32 %v2312_v56, %v1211_v61 }
 0x1f2   :  { %v1429_v34 = vmax.f32 %v1427_v16, %v1428_v25  ;;  %v1441_v35 = vmax.f32 %v1439_v22, %v1440_v26  ;;  %v1432_v36 = vsel %vm938_vm2, %v1280_v27, -inf  ;;  %v1227_v37 = vadd.f32 %v1937_v5, %v2312_v56 }
 0x1f3   :  { %v1410_v50 = vmax.f32 %v1408_v20, %v1409_v29  ;;  %v1422_v38 = vmax.f32 %v1420_v21, %v1421_v30  ;;  %v1433_v39 = vrot.slane %v1432_v36, 4  ;;  %v1453_v40 = vsel %vm938_vm2, %v1283_v31, -inf  ;;  %v1943_v41 = vpop.f32.mrb[32].mxu0 }
 0x1f4   :  { %v1430_v49 = vrot.slane %v1429_v34, 1  ;;  %v1442_v63 = vrot.slane %v1441_v35, 2  ;;  %v1454_v42 = vrot.slane %v1453_v40, 4  ;;  %v1282_v43 = vmax.f32 %v1212_v32, 0.0  ;;  %v1241_v44 = vpop.f32.mrb[33].mxu0 }
 0x1f5   :  { %v1576_v45 = vsel %vm1555_vm4, %v1417_v19, %v1410_v50  ;;  %v1423_v46 = vrot.slane %v1422_v38, 1  ;;  %v1434_v47 = vmax.f32 %v1432_v36, %v1433_v39  ;;  %v1285_v48 = vmax.f32 %v1227_v37, 0.0 }
 0x1f6   :  { %v1431_v51 = vmax.f32 %v1429_v34, %v1430_v49  ;;  %v1443_v61 = vmax.f32 %v1441_v35, %v1442_v63  ;;  %v1455_v53 = vmax.f32 %v1453_v40, %v1454_v42  ;;  %v1446_v54 = vsel %vm938_vm2, %v1282_v43, -inf }
 0x1f7   :  { %v1424_v57 = vmax.f32 %v1422_v38, %v1423_v46  ;;  %v1435_v58 = vrot.slane %v1434_v47, 2  ;;  %v1447_v60 = vrot.slane %v1446_v54, 4  ;;  %v1467_v62 = vsel %vm938_vm2, %v1285_v48, -inf  ;;  %v1946_v0 = vpop.f32.mrb[34].mxu0 }
 0x1f8   :  { %v1444_v1 = vrot.slane %v1443_v61, 1  ;;  %v1456_v2 = vrot.slane %v1455_v53, 2  ;;  %v1468_v3 = vrot.slane %v1467_v62, 4  ;;  %v1222_v4 = vadd.f32 %v2312_v56, %v1221_v10  ;;  %v1251_v5 = vpop.f32.mrb[35].mxu0 }
 0x1f9   :  { %v1577_v7 = vsel %vm1557_vm5, %v1424_v57, %v1576_v45  ;;  %v1436_v8 = vmax.f32 %v1434_v47, %v1435_v58  ;;  %v1448_v9 = vmax.f32 %v1446_v54, %v1447_v60  ;;  %v1568_v6 = vsel %vm1567_vm10, %v2342_v33, %v2350_v55 }
 0x1fa   :  { %v1445_v11 = vmax.f32 %v1443_v61, %v1444_v1  ;;  %v1578_v12 = vsel %vm1559_vm6, %v1431_v51, %v1577_v7  ;;  %v1457_v13 = vmax.f32 %v1455_v53, %v1456_v2  ;;  %v1469_v14 = vmax.f32 %v1467_v62, %v1468_v3 }
 0x1fb   :  { %v1437_v15 = vrot.slane %v1436_v8, 1  ;;  %v1449_v16 = vrot.slane %v1448_v9, 2  ;;  %v1284_v17 = vmax.f32 %v1222_v4, 0.0  ;;  %v1575_v10 = vsel %vm1567_vm10, %v2365_v59, %v1574_v24 }
 0x1fc   :  { %v1458_v19 = vrot.slane %v1457_v13, 1  ;;  %v1470_v20 = vrot.slane %v1469_v14, 2  ;;  %v1967_v33 = vpack.c.bf16 %v1575_v10, %v1568_v6  ;;  %v1237_v55 = vadd.f32 %v1940_v23, %v2312_v56 }
 0x1fd   :  { %v1438_v21 = vmax.f32 %v1436_v8, %v1437_v15  ;;  %v1450_v22 = vmax.f32 %v1448_v9, %v1449_v16  ;;  %v1460_v25 = vsel %vm938_vm2, %v1284_v17, -inf  ;;  %v1232_v26 = vadd.f32 %v2312_v56, %v1231_v28 }
 0x1fe   :  { %v1459_v27 = vmax.f32 %v1457_v13, %v1458_v19  ;;  %v1471_v29 = vmax.f32 %v1469_v14, %v1470_v20  ;;  %v1461_v59 = vrot.slane %v1460_v25, 4  ;;  %1969 = vmatpush3.bf16.xpose.msk.msra.mxu1 %vm2393_vm11, %v1967_v33  ;;  %v1287_v24 = vmax.f32 %v1237_v55, 0.0 }
 0x1ff   :  { %v1579_v30 = vsel %vm1561_vm7, %v1438_v21, %v1578_v12  ;;  %v1451_v31 = vrot.slane %v1450_v22, 1  ;;  %v1286_v32 = vmax.f32 %v1232_v26, 0.0  ;;  %v1247_v34 = vadd.f32 %v1943_v41, %v2312_v56  ;;  %1970 = vmatprep.subr.bf16.mxu1 %v1981_v52 }
 0x200   :  { %v1580_v23 = vsel %vm1563_vm8, %v1445_v11, %v1579_v30  ;;  %v1472_v35 = vrot.slane %v1471_v29, 1  ;;  %v1462_v36 = vmax.f32 %v1460_v25, %v1461_v59  ;;  %v1481_v28 = vsel %vm938_vm2, %v1287_v24, -inf }
 0x201   :  { %v1452_v37 = vmax.f32 %v1450_v22, %v1451_v31  ;;  %v1482_v50 = vrot.slane %v1481_v28, 4  ;;  %v1474_v38 = vsel %vm938_vm2, %v1286_v32, -inf  ;;  %v1289_v39 = vmax.f32 %v1247_v34, 0.0 }
 0x202   :  { %v1473_v40 = vmax.f32 %v1471_v29, %v1472_v35  ;;  %v1463_v49 = vrot.slane %v1462_v36, 2  ;;  %v1475_v63 = vrot.slane %v1474_v38, 4  ;;  %v1242_v42 = vadd.f32 %v2312_v56, %v1241_v44 }
 0x203   :  { %v1581_v41 = vsel %vm1565_vm9, %v1452_v37, %v1580_v23  ;;  %v1483_v43 = vmax.f32 %v1481_v28, %v1482_v50  ;;  %v1495_v52 = vsel %vm938_vm2, %v1289_v39, -inf  ;;  %v1257_v45 = vadd.f32 %v1946_v0, %v2312_v56  ;;  %v1516_v50 = vld [vmem:[%s2441_s7] sm:$0xf] }
 0x204   :  { %v1464_v46 = vmax.f32 %v1462_v36, %v1463_v49  ;;  %v1476_v47 = vmax.f32 %v1474_v38, %v1475_v63  ;;  %v1496_v48 = vrot.slane %v1495_v52, 4  ;;  %v1288_v51 = vmax.f32 %v1242_v42, 0.0  ;;  %v1521_v38 = vpop.permute.xlu0 %1520 }
 0x205   :  { %v1484_v61 = vrot.slane %v1483_v43, 2  ;;  %v1291_v53 = vmax.f32 %v1257_v45, 0.0  ;;  %v1252_v54 = vadd.f32 %v2312_v56, %v1251_v5  ;;  %v1582_v57 = vsel %vm1567_vm10, %v1459_v27, %v1581_v41 }
 0x206   :  { %v1465_v58 = vrot.slane %v1464_v46, 1  ;;  %v1477_v60 = vrot.slane %v1476_v47, 2  ;;  %v1497_v44 = vmax.f32 %v1495_v52, %v1496_v48  ;;  %v1488_v62 = vsel %vm938_vm2, %v1288_v51, -inf }
 0x207   :  { %v1485_v1 = vmax.f32 %v1483_v43, %v1484_v61  ;;  %v1489_v2 = vrot.slane %v1488_v62, 4  ;;  %v1509_v3 = vsel %vm938_vm2, %v1291_v53, -inf  ;;  %v1290_v0 = vmax.f32 %v1252_v54, 0.0 }
 0x208   :  { %v1466_v4 = vmax.f32 %v1464_v46, %v1465_v58  ;;  %v1478_v7 = vmax.f32 %v1476_v47, %v1477_v60  ;;  %v1498_v8 = vrot.slane %v1497_v44, 2  ;;  %v1510_v9 = vrot.slane %v1509_v3, 4 }
 0x209   :  { %v1486_v6 = vrot.slane %v1485_v1, 1  ;;  %v1490_v11 = vmax.f32 %v1488_v62, %v1489_v2  ;;  %v1502_v56 = vsel %vm938_vm2, %v1290_v0, -inf }
 0x20a   :  { %v1583_v5 = vsel %vm1555_vm4, %v1473_v40, %v1466_v4  ;;  %v1479_v12 = vrot.slane %v1478_v7, 1  ;;  %v1499_v13 = vmax.f32 %v1497_v44, %v1498_v8  ;;  %v1511_v14 = vmax.f32 %v1509_v3, %v1510_v9 }
 0x20b   :  { %v1491_v15 = vrot.slane %v1490_v11, 2  ;;  %v1503_v16 = vrot.slane %v1502_v56, 4  ;;  %v1487_v19 = vmax.f32 %v1485_v1, %v1486_v6 }
 0x20c   :  { %v1480_v17 = vmax.f32 %v1478_v7, %v1479_v12  ;;  %v1512_v10 = vrot.slane %v1511_v14, 2  ;;  %v1500_v21 = vrot.slane %v1499_v13, 1 }
 0x20d   :  { %v1492_v20 = vmax.f32 %v1490_v11, %v1491_v15  ;;  %v1504_v33 = vmax.f32 %v1502_v56, %v1503_v16 }
 0x20e   :  { %v1584_v55 = vsel %vm1557_vm5, %v1480_v17, %v1583_v5  ;;  %v1513_v22 = vmax.f32 %v1511_v14, %v1512_v10  ;;  %v1501_v24 = vmax.f32 %v1499_v13, %v1500_v21 }
 0x20f   :  { %v1493_v25 = vrot.slane %v1492_v20, 1  ;;  %v1585_v26 = vsel %vm1559_vm6, %v1487_v19, %v1584_v55  ;;  %v1505_v27 = vrot.slane %v1504_v33, 2 }
 0x210   :  { %v1514_v30 = vrot.slane %v1513_v22, 1 }
 0x211   :  { %v1494_v29 = vmax.f32 %v1492_v20, %v1493_v25  ;;  %v1506_v59 = vmax.f32 %v1504_v33, %v1505_v27 }
 0x212   :  { %v1515_v35 = vmax.f32 %v1513_v22, %v1514_v30 }
 0x213   :  { %v1586_v31 = vsel %vm1561_vm7, %v1494_v29, %v1585_v26  ;;  %v1507_v32 = vrot.slane %v1506_v59, 1 }
 0x214   :  { %v1587_v34 = vsel %vm1563_vm8, %v1501_v24, %v1586_v31 }
 0x215   :  { %v1508_v23 = vmax.f32 %v1506_v59, %v1507_v32 }
 0x217   :  { %v1588_v36 = vsel %vm1565_vm9, %v1508_v23, %v1587_v34 }
 0x218   :  { %v1589_v28 = vsel %vm1567_vm10, %v1515_v35, %v1588_v36 }
 0x219   :  { %v1971_v37 = vpack.c.bf16 %v1589_v28, %v1582_v57 }
 0x21b   :  { %1973 = vmatpush3.bf16.xpose.msk.msra.mxu1 %vm2393_vm11, %v1971_v37 }
 0x222   :  { %1956 = vmatmul.mubr.msk.f32.vlgmr.msra.gmra.mrb[32].mxu1 %vm938_vm2, %v1516_v50 }
 0x2f5   :  { %v1667_v39 = vpop.f32.mrb[32].mxu1 }
 0x2f6   :  { %v1668_v40 = vadd.f32 %v1667_v39, %v1521_v38  ;;  %v1957_v49 = vpop.f32.mrb[33].mxu1 }
 0x2f8   :  { %1672 = vst.msk [vmem:[%s2442_s9] sm:$0xf] %vm1671_vm12, %v1668_v40 }

</bundles_post_ra>
